<compile_context>
chip_gen: v6e
topology: v6e:2x2x1
jax: 0.10.0
libtpu: 0.0.40
codegen_flags: <defaults>
</compile_context>

<pallas_src>
import functools
import math

import jax
import jax.numpy as jnp
from jax.experimental import pallas as pl
from jax.experimental.pallas import tpu as pltpu

LANE = 128       # lane width (last-dim tile)
SUB = 8          # sublanes per f32 vreg
TM_MAX = 4096    # rows per grid step -> 2 MiB/input/block (f32), 8 MiB double-buffered
FOLD_MAX = 64    # accumulator rows: wider accumulator -> more independent VALU chains
NCORES = 2       # leading "parallel" grid axis: maps to v7x's 2 TensorCores

ALPHA = 0.5
GAMMA = 1.0


def _bce_from_logits(x, t):
    # Numerically stable BCE-with-logits:  softplus(x) - t*x
    #   = max(x,0) - t*x + log1p(exp(-|x|))
    # (The torch reference computes log(sigmoid(x)) directly and can emit -inf/NaN
    #  for saturated logits; this form is the finite/stable equivalent.)
    # TODO(synk): if a v7x bundle dump shows the single EUP slot binding
    # (2 transcendentals/elem at 3.2 TB/s arrival), move exp/log1p to bf16.
    return jnp.maximum(x, 0.0) - x * t + jnp.log1p(jnp.exp(-jnp.abs(x)))


def _focal_partial_kernel(x_ref, t_ref, out_ref, *, tm, fold, rows, steps, needs_mask):
    c = pl.program_id(0)   # core-split axis ("parallel")
    i = pl.program_id(1)   # streaming reduction axis ("arbitrary")

    @pl.when(i == 0)
    def _():
        out_ref[...] = jnp.zeros_like(out_ref)

    x = x_ref[...].astype(jnp.float32)
    t = t_ref[...].astype(jnp.float32)
    bce = _bce_from_logits(x, t)

    def _accumulate(v):
        # Fold tm rows into the persistent (fold, 128) accumulator: VPU adds only.
        part = v.reshape(tm // fold, fold, LANE).sum(axis=0)
        out_ref[...] += part[None, ...]

    if needs_mask:
        vb = c * steps + i            # UNclamped virtual block id (index_map clamps DMA)
        row0 = vb * tm
        partial = row0 + tm > rows    # only the last real block / the clamped duplicate

        @pl.when(jnp.logical_not(partial))
        def _():
            _accumulate(bce)

        @pl.when(partial)
        def _():
            r = jax.lax.broadcasted_iota(jnp.int32, (tm, LANE), 0)
            _accumulate(jnp.where(row0 + r < rows, bce, 0.0))
    else:
        _accumulate(bce)


def focal_loss(inputs, targets, alpha=ALPHA, gamma=GAMMA, smooth=1):
    """Pallas equivalent of FocalLoss.forward(inputs, targets, alpha, gamma, smooth).

    `smooth` is accepted for signature parity; the reference forward never uses it.
    Inputs/targets may be any float/int dtype; casting to f32 happens in-kernel, so
    passing bf16/int8 targets cuts HBM traffic with no other changes.
    """
    del smooth
    x = inputs.reshape(-1)
    t = targets.reshape(-1)
    n = x.shape[0]
    rem = n % LANE
    main = n - rem

    total = jnp.zeros((), jnp.float32)

    # <=127-element ragged tail handled in the wrapper (no full-array pad copy).
    if rem:
        xt = x[main:].astype(jnp.float32)
        tt = t[main:].astype(jnp.float32)
        total = total + jnp.sum(_bce_from_logits(xt, tt))

    if main:
        rows = main // LANE
        x2 = (x if rem == 0 else x[:main]).reshape(rows, LANE)
        t2 = (t if rem == 0 else t[:main]).reshape(rows, LANE)

        tm = min(TM_MAX, ((rows + SUB - 1) // SUB) * SUB)   # multiple of 8, capped
        fold = math.gcd(tm, FOLD_MAX)                       # 8/16/32/64 and divides tm
        num_blocks = pl.cdiv(rows, tm)
        steps = pl.cdiv(num_blocks, NCORES)
        needs_mask = (NCORES * steps * tm) != rows

        def in_map(c, i):
            # Clamp so the DMA for a core's extra (virtual) block stays in-bounds;
            # its contribution is masked to zero inside the kernel.
            return (jnp.minimum(c * steps + i, num_blocks - 1), 0)

        kernel = functools.partial(
            _focal_partial_kernel, tm=tm, fold=fold, rows=rows, steps=steps,
            needs_mask=needs_mask)

        stream_bytes = main * (x2.dtype.itemsize + t2.dtype.itemsize)
        cost = pl.CostEstimate(
            flops=6 * main,
            transcendentals=2 * main,
            bytes_accessed=stream_bytes + NCORES * fold * LANE * 4)

        partials = pl.pallas_call(
            kernel,
            out_shape=jax.ShapeDtypeStruct((NCORES, fold, LANE), jnp.float32),
            grid_spec=pltpu.PrefetchScalarGridSpec(
                num_scalar_prefetch=0,
                grid=(NCORES, steps),
                in_specs=[
                    pl.BlockSpec((tm, LANE), in_map),
                    pl.BlockSpec((tm, LANE), in_map),
                ],
                out_specs=pl.BlockSpec((1, fold, LANE), lambda c, i: (c, 0, 0)),
            ),
            compiler_params=pltpu.CompilerParams(
                dimension_semantics=("parallel", "arbitrary")),
            cost_estimate=cost,
        )(x2, t2)
        total = total + jnp.sum(partials)

    bce_mean = total / n
    return alpha * (1.0 - jnp.exp(-bce_mean)) ** gamma * bce_mean


def _focal_loss_ref(inputs, targets, alpha=ALPHA, gamma=GAMMA):
    p = jax.nn.sigmoid(inputs.reshape(-1).astype(jnp.float32))
    t = targets.reshape(-1).astype(jnp.float32)
    bce = jnp.mean(-(t * jnp.log(p) + (1.0 - t) * jnp.log(1.0 - p)))
    return alpha * (1.0 - jnp.exp(-bce)) ** gamma * bce


if __name__ == "__main__":
    key = jax.random.PRNGKey(0)
    k1, k2 = jax.random.split(key)
    # inputs: raw logits; targets: binary masks  (NCHW, batch=2, ch=4, 16x16)
    inputs = jax.random.normal(k1, (2, 4, 16, 16), dtype=jnp.float32)
    targets = (jax.random.uniform(k2, (2, 4, 16, 16)) > 0.5).astype(jnp.float32)

    loss = focal_loss(inputs, targets, alpha=ALPHA, gamma=GAMMA)
    loss = jax.block_until_ready(loss)

    ref = _focal_loss_ref(inputs, targets, alpha=ALPHA, gamma=GAMMA)
    assert jnp.allclose(loss, ref, atol=1e-5, rtol=1e-5), (loss, ref)
    print("KERNEL_OK")
</pallas_src>

<mosaic_0001>
module attributes {stable_mosaic.version = 11 : i64} {
  func.func @_focal_partial_kernel(%arg0: i32, %arg1: i32, %arg2: memref<16x128xf32, #tpu.memory_space<vmem>>, %arg3: memref<16x128xf32, #tpu.memory_space<vmem>>, %arg4: memref<1x16x128xf32, #tpu.memory_space<vmem>>) attributes {dimension_semantics = [#tpu.dimension_semantics<parallel>, #tpu.dimension_semantics<arbitrary>], iteration_bounds = array<i64: 2, 1>, scalar_prefetch = 0 : i64, scratch_operands = 0 : i64, tpu.core_type = #tpu.core_type<tc>, window_params = [{transform_indices = @transform_0, window_bounds = array<i64: 16, 128>}, {transform_indices = @transform_1, window_bounds = array<i64: 16, 128>}, {transform_indices = @transform_2, window_bounds = array<i64: 1, 16, 128>}]} {
    %c0_i32 = arith.constant 0 : i32
    %0 = arith.cmpi eq, %arg1, %c0_i32 : i32
    %1 = arith.extui %0 : i1 to i32
    %c0_i32_0 = arith.constant 0 : i32
    %2 = arith.cmpi ne, %1, %c0_i32_0 : i32
    scf.if %2 {
      %cst_9 = arith.constant 0.000000e+00 : f32
      %25 = vector.broadcast %cst_9 : f32 to vector<1x16x128xf32>
      %c0_10 = arith.constant 0 : index
      %c0_11 = arith.constant 0 : index
      %c0_12 = arith.constant 0 : index
      %26 = vector.load %arg4[%c0_10, %c0_11, %c0_12] : memref<1x16x128xf32, #tpu.memory_space<vmem>>, vector<1x16x128xf32>
      tpu.vector_store %arg4[%c0_10, %c0_11, %c0_12], %25 {strides = array<i32>} : memref<1x16x128xf32, #tpu.memory_space<vmem>>, vector<1x16x128xf32>,
    } else {
    }
    %c0 = arith.constant 0 : index
    %c0_1 = arith.constant 0 : index
    %3 = vector.load %arg2[%c0, %c0_1] : memref<16x128xf32, #tpu.memory_space<vmem>>, vector<16x128xf32>
    %c0_2 = arith.constant 0 : index
    %c0_3 = arith.constant 0 : index
    %4 = vector.load %arg3[%c0_2, %c0_3] : memref<16x128xf32, #tpu.memory_space<vmem>>, vector<16x128xf32>
    %cst = arith.constant 0.000000e+00 : f32
    %5 = vector.broadcast %cst : f32 to vector<16x128xf32>
    %6 = arith.maximumf %3, %5 : vector<16x128xf32>
    %7 = arith.mulf %3, %4 : vector<16x128xf32>
    %8 = arith.subf %6, %7 : vector<16x128xf32>
    %9 = math.absf %3 : vector<16x128xf32>
    %cst_4 = arith.constant 0.000000e+00 : f32
    %10 = vector.broadcast %cst_4 : f32 to vector<16x128xf32>
    %11 = arith.subf %10, %9 : vector<16x128xf32>
    %12 = math.exp %11 : vector<16x128xf32>
    %13 = math.log1p %12 : vector<16x128xf32>
    %14 = arith.addf %8, %13 : vector<16x128xf32>
    %c1_i32 = arith.constant 1 : i32
    %15 = arith.muli %arg0, %c1_i32 : i32
    %16 = arith.addi %15, %arg1 : i32
    %c16_i32 = arith.constant 16 : i32
    %17 = arith.muli %16, %c16_i32 : i32
    %c16_i32_5 = arith.constant 16 : i32
    %18 = arith.addi %17, %c16_i32_5 : i32
    %c16_i32_6 = arith.constant 16 : i32
    %19 = arith.cmpi sgt, %18, %c16_i32_6 : i32
    %true = arith.constant true
    %20 = arith.xori %19, %true : i1
    %21 = arith.extui %20 : i1 to i32
    %c0_i32_7 = arith.constant 0 : i32
    %22 = arith.cmpi ne, %21, %c0_i32_7 : i32
    scf.if %22 {
      %25 = vector.shape_cast %14 : vector<16x128xf32> to vector<1x16x128xf32>
      %cst_9 = arith.constant dense<0.000000e+00> : vector<16x128xf32>
      %26 = vector.multi_reduction <add>, %25, %cst_9 [0] : vector<1x16x128xf32> to vector<16x128xf32>
      %c0_10 = arith.constant 0 : index
      %c0_11 = arith.constant 0 : index
      %c0_12 = arith.constant 0 : index
      %27 = vector.load %arg4[%c0_10, %c0_11, %c0_12] : memref<1x16x128xf32, #tpu.memory_space<vmem>>, vector<1x16x128xf32>
      %28 = vector.shape_cast %26 : vector<16x128xf32> to vector<1x16x128xf32>
      %29 = arith.addf %27, %28 : vector<1x16x128xf32>
      %c0_13 = arith.constant 0 : index
      %c0_14 = arith.constant 0 : index
      %c0_15 = arith.constant 0 : index
      %30 = vector.load %arg4[%c0_13, %c0_14, %c0_15] : memref<1x16x128xf32, #tpu.memory_space<vmem>>, vector<1x16x128xf32>
      tpu.vector_store %arg4[%c0_13, %c0_14, %c0_15], %29 {strides = array<i32>} : memref<1x16x128xf32, #tpu.memory_space<vmem>>, vector<1x16x128xf32>,
    } else {
    }
    %23 = arith.extui %19 : i1 to i32
    %c0_i32_8 = arith.constant 0 : i32
    %24 = arith.cmpi ne, %23, %c0_i32_8 : i32
    scf.if %24 {
      %25 = tpu.iota {dimensions = array<i32: 0>} : vector<16x128xi32>
      %26 = vector.broadcast %17 : i32 to vector<16x128xi32>
      %27 = arith.addi %26, %25 : vector<16x128xi32>
      %c16_i32_9 = arith.constant 16 : i32
      %28 = vector.broadcast %c16_i32_9 : i32 to vector<16x128xi32>
      %29 = arith.cmpi slt, %27, %28 : vector<16x128xi32>
      %cst_10 = arith.constant 0.000000e+00 : f32
      %30 = vector.broadcast %cst_10 : f32 to vector<16x128xf32>
      %31 = arith.select %29, %14, %30 : vector<16x128xi1>, vector<16x128xf32>
      %32 = vector.shape_cast %31 : vector<16x128xf32> to vector<1x16x128xf32>
      %cst_11 = arith.constant dense<0.000000e+00> : vector<16x128xf32>
      %33 = vector.multi_reduction <add>, %32, %cst_11 [0] : vector<1x16x128xf32> to vector<16x128xf32>
      %c0_12 = arith.constant 0 : index
      %c0_13 = arith.constant 0 : index
      %c0_14 = arith.constant 0 : index
      %34 = vector.load %arg4[%c0_12, %c0_13, %c0_14] : memref<1x16x128xf32, #tpu.memory_space<vmem>>, vector<1x16x128xf32>
      %35 = vector.shape_cast %33 : vector<16x128xf32> to vector<1x16x128xf32>
      %36 = arith.addf %34, %35 : vector<1x16x128xf32>
      %c0_15 = arith.constant 0 : index
      %c0_16 = arith.constant 0 : index
      %c0_17 = arith.constant 0 : index
      %37 = vector.load %arg4[%c0_15, %c0_16, %c0_17] : memref<1x16x128xf32, #tpu.memory_space<vmem>>, vector<1x16x128xf32>
      tpu.vector_store %arg4[%c0_15, %c0_16, %c0_17], %36 {strides = array<i32>} : memref<1x16x128xf32, #tpu.memory_space<vmem>>, vector<1x16x128xf32>,
    } else {
    }
    return
  }
  func.func @transform_0(%arg0: i32, %arg1: i32) -> (i32, i32) {
    %c1_i32 = arith.constant 1 : i32
    %0 = arith.muli %arg0, %c1_i32 : i32
    %1 = arith.addi %0, %arg1 : i32
    %c0_i32 = arith.constant 0 : i32
    %2 = arith.minsi %1, %c0_i32 : i32
    %c0_i32_0 = arith.constant 0 : i32
    %c0_i32_1 = arith.constant 0 : i32
    return %2, %c0_i32_0 : i32, i32
  }
  func.func @transform_1(%arg0: i32, %arg1: i32) -> (i32, i32) {
    %c1_i32 = arith.constant 1 : i32
    %0 = arith.muli %arg0, %c1_i32 : i32
    %1 = arith.addi %0, %arg1 : i32
    %c0_i32 = arith.constant 0 : i32
    %2 = arith.minsi %1, %c0_i32 : i32
    %c0_i32_0 = arith.constant 0 : i32
    %c0_i32_1 = arith.constant 0 : i32
    return %2, %c0_i32_0 : i32, i32
  }
  func.func @transform_2(%arg0: i32, %arg1: i32) -> (i32, i32, i32) {
    %c0_i32 = arith.constant 0 : i32
    %c0_i32_0 = arith.constant 0 : i32
    %c0_i32_1 = arith.constant 0 : i32
    return %arg0, %c0_i32, %c0_i32_0 : i32, i32, i32
  }
}

</mosaic_0001>

<bundles_post_ra>
// kernel: tpu_custom_call.1
= control target key start
LH: loop header
LB: loop body
LE: loop exit
PB: predicated region body
PF: predicated region fallthrough
CT: control target
= control target key end

     0   :  { %7 = vsyncpa [#allocation3], 0  ;;  %s973_s0 = inlined_call_operand.hbm [shape: f32[16,128], index: 0, kind: input, shape index: {}]   ;;  %s974_s1 = inlined_call_operand.hbm [shape: f32[16,128], index: 1, kind: input, shape index: {}]   ;;  %s975_s2 = inlined_call_operand.hbm [shape: f32[2,16,128], index: 2, kind: output, shape index: {}]  }
   0x1   :  { %9 = vsyncpa [#allocation3 + $0x1], 0 }
   0x2   :  { %10 = vsyncpa [#allocation6], 0 }
   0x3   :  { %12 = vsyncpa [#allocation6 + $0x1], 0 }
   0x4   :  { %13 = vsyncpa [#allocation4], 0 }
   0x5   :  { %15 = vsyncpa [#allocation4 + $0x1], 0  ;;  %s754_s9 = smov 0   ;;  %s756_s10 = smov 0  }
   0x6   :  { %s758_s11 = smov 0   ;;  %s760_s12 = smov 0  }
   0x7   :  { %s762_s13 = smov 0   ;;  %s764_s14 = smov 0  }
   0x8   :  { %s766_s15 = smov 0   ;;  %s768_s16 = smov 0  }
   0x9 LB: > { %s439_s17 = sadd.s32 4294967295, %s729_s16   ;;  %s440_s18 = sadd.s32 4294967294, %s729_s16   ;;  %s729_s16 = sphi %s768_s16, %s21_s16   ;;  %s725_s15 = sphi %s766_s15, %s994_s15   ;;  %s721_s14 = sphi %s764_s14, %s993_s14   ;;  %s717_s13 = sphi %s762_s13, %s963_s13   ;;  %s713_s12 = sphi %s760_s12, %s992_s12   ;;  %s709_s11 = sphi %s758_s11, %s991_s11   ;;  %s705_s10 = sphi %s756_s10, %s990_s10   ;;  %s701_s9 = sphi %s754_s9, %s989_s9  }
   0xa   : > { %s33_s19 = sadd.s32 1, %s725_s15  ;;  %p698_p1 = scmp.ne.s32.totalorder %s717_s13, 0 }
   0xb   : > { %p35_p0 = scmp.ge.s32.totalorder %s33_s19, 2  ;;  %p54_p2 = scmp.eq.s32.totalorder %s729_s16, 0 }
   0xc   : > { %p59_p3 = scmp.ne.s32.totalorder %s717_s13, %s713_s12  ;;  %p60_p5 = scmp.eq.s32.totalorder %s439_s17, 0 }
   0xd   : > { %s996_s19 = smov (%p35_p0, %s33_s19), 0  ;;  %p800_p4 = por %p698_p1, %p54_p2 }
   0xe   : > { %p804_p6 = por %p60_p5, %p59_p3  ;;  %s101_s22 = ssub.s32 %s725_s15, %s996_s19 }
   0xf   : > { %p102_p7 = scmp.eq.s32.totalorder %s101_s22, 0  ;;  %s104_s23 = sadd.s32 1, %s709_s11 }
  0x10   : > { %s979_s21 = scalar_select %p804_p6, 1, 0 }
  0x11   : > { %s812_s24 = scalar_select %p102_p7, %s709_s11, %s104_s23  }
  0x12   : > { %p114_p8 = scmp.ne.s32.totalorder %s709_s11, %s705_s10  ;;  %p115_p9 = scmp.eq.s32.totalorder %s439_s17, 1 }
  0x13   : > { %p120_p10 = scmp.ne.s32.totalorder %s705_s10, %s701_s9  ;;  %p121_p11 = scmp.eq.s32.totalorder %s440_s18, 1 }
  0x14   : > { %p818_p12 = por %p115_p9, %p114_p8  ;;  %p481_p1 = scmp.lt.s32.totalorder %s729_s16, 2 }
  0x15   : > { %p823_p0 = por %p121_p11, %p120_p10  ;;  %s731_s27 = smov [#allocation2]  }
  0x16   : > { %s980_s25 = scalar_select %p818_p12, 1, 0 }
  0x17   : > { %s981_s26 = scalar_select %p823_p0, 1, 0 }
  0x18   : > { %s155_s28 = sshll.u32 %s731_s27, 4  ;;  %p830_p2 = pnand %p481_p1, %p800_p4  ;;  %s156_s28 = int_to_ptr.vmem [resolvable:$true] %s155_s28 }
  0x19   : > { %s568_s4 = scalar_lea.hbm %s973_s0, 256 }
  0x1a   : > { %p569_p3 = scmp.ne.s32.totalorder %s973_s0, %s568_s4  ;;  %p570_p5 = pneg %p830_p2 }
  0x1b   : > { %p575_p8 = scmp.lt.s32.totalorder %s568_s4, %s568_s4 }
  0x1c   : > { %p571_p7 = pnand %p570_p5, %p569_p3 }
  0x1e   : > { %p572_p4 = pneg %p571_p7 }
  0x20   : > { %p577_p9 = pnand %p575_p8, %p572_p4 }
  0x22   : > { %580 = shalt.err (!%p577_p9)
}
  0x23   : > { %s581_s7 = scalar_lea.vmem %s156_s28, 256  ;;  %s588_s8 = scalar_lea.vmem %s156_s28, 512 }
  0x24   : > { %p582_p10 = scmp.ne.s32.totalorder %s156_s28, %s581_s7  ;;  %p589_p13 = scmp.lt.s32.totalorder %s156_s28, %s156_s28 }
  0x25   : > { %p590_p0 = scmp.lt.s32.totalorder %s588_s8, %s581_s7 }
  0x26   : > { %p584_p11 = pnand %p582_p10, %p570_p5 }
  0x27   : > { %p591_p12 = por %p590_p0, %p589_p13 }
  0x28   : > { %p585_p1 = pneg %p584_p11 }
  0x2a   : > { %p592_p6 = pnand %p591_p12, %p585_p1 }
  0x2c   : > { %595 = shalt.err (!%p592_p6)
}
  0x2d   : > { %s732_s12 = smov 128   ;;  %s733_s17 = smov 8  }
  0x2e   : > { %473 = dma.hbm_to_vmem [thread:$0]  (!%p830_p2), %s973_s0, 256, %s156_s28, [#allocation3], %s732_s12, %s732_s12, %s733_s17  }
  0x2f   : > { %p449_p3 = scmp.ge.s32.totalorder %s729_s16, 1  ;;  %p187_p7 = scmp.lt.s32.totalorder %s729_s16, 3 }
  0x30   : > { %s734_s23 = smov [#allocation5]   ;;  %s596_s4 = scalar_lea.hbm %s974_s1, 256 }
  0x31   : > { %p855_p4 = pnand %p449_p3, %p187_p7  ;;  %s179_s27 = sshll.u32 %s734_s23, 4  ;;  %s180_s27 = int_to_ptr.vmem [resolvable:$true] %s179_s27 }
  0x32   : > { %p597_p6 = scmp.ne.s32.totalorder %s974_s1, %s596_s4  ;;  %p603_p0 = scmp.lt.s32.totalorder %s596_s4, %s596_s4 }
  0x33   : > { %s983_s22 = scalar_select %p855_p4, 1, 0 }
  0x34   : > { %p599_p12 = pnand %p597_p6, %p570_p5 }
  0x36   : > { %p600_p13 = pneg %p599_p12 }
  0x38   : > { %p605_p8 = pnand %p603_p0, %p600_p13 }
  0x3a   : > { %608 = shalt.err (!%p605_p8)
}
  0x3b   : > { %s609_s28 = scalar_lea.vmem %s180_s27, 256  ;;  %s616_s7 = scalar_lea.vmem %s180_s27, 512 }
  0x3c   : > { %p610_p9 = scmp.ne.s32.totalorder %s180_s27, %s609_s28  ;;  %p617_p1 = scmp.lt.s32.totalorder %s180_s27, %s180_s27 }
  0x3d   : > { %p618_p3 = scmp.lt.s32.totalorder %s616_s7, %s609_s28 }
  0x3e   : > { %p612_p10 = pnand %p610_p9, %p570_p5 }
  0x3f   : > { %p619_p7 = por %p618_p3, %p617_p1 }
  0x40   : > { %p613_p11 = pneg %p612_p10 }
  0x42   : > { %p620_p4 = pnand %p619_p7, %p613_p11 }
  0x44   : > { %623 = shalt.err (!%p620_p4)
}
  0x45   : > { %476 = dma.hbm_to_vmem [thread:$0]  (!%p830_p2), %s974_s1, 256, %s180_s27, [#allocation6], %s732_s12, %s732_s12, %s733_s17  }
  0x46   : > { %p984_p6 = scmp.ne.s32.totalorder %s983_s22, 0 }
  0x47   : > { %s193_s20 = sand.u32 (!%p984_p6), 1, %s717_s13   ;;  %p985_p5 = scmp.ne.s32.totalorder (!%p984_p6), %s979_s21, 0 }
  0x48   : > { %191 = sbr.rel (%p984_p6) target bundleno = 171 (0xab), region = 28  ;;  %s450_s23 = sshll.u32 (!%p984_p6), %s193_s20, 4 }
  0x49   : > { %s194_s30 = scalar_lea.sflag (!%p984_p6), [#allocation3], %s193_s20  ;;  %s197_s3 = scalar_lea.vmem (!%p984_p6), [#allocation2], %s450_s23 }
  0x4d   : > { %687 = dma.done.wait (%p985_p5), %s194_s30, 256  }
  0x4e   : > { %689 = vsyncadd (%p985_p5), %s194_s30, 4294967040  ;;  %s203_s29 = scalar_lea.sflag [#allocation6], %s193_s20  ;;  %s206_s4 = scalar_lea.vmem [#allocation5], %s450_s23 }
  0x4f   : > { %691 = dma.done.wait (%p985_p5), %s203_s29, 256  }
  0x50   : > { %693 = vsyncadd (%p985_p5), %s203_s29, 4294967040  ;;  %s229_s12 = sand.u32 1, %s705_s10   ;;  %s453_s17 = sshll.u32 %s721_s14, 4  ;;  %v735_v0 = vmov 0.0   ;;  %v246_v1 = vld [vmem:[%s197_s3] sm:$0xff]  ;;  %v247_v2 = vld [vmem:[%s197_s3 + $0x8] sm:$0xff] }
  0x51   : > { %s452_s22 = sshll.u32 %s229_s12, 4  ;;  %s893_s27 = sadd.s32 16, %s453_s17  ;;  %v256_v3 = vand.u32 2147483647, %v246_v1  ;;  %v257_v4 = vand.u32 2147483647, %v247_v2 }
  0x52   : > { %s895_s5 = scalar_lea.vmem [#allocation7], %s452_s22  ;;  %v248_v15 = vld [vmem:[%s206_s4] sm:$0xff]  ;;  %v249_v16 = vld [vmem:[%s206_s4 + $0x8] sm:$0xff]  ;;  %v250_v18 = vmax.f32 %v246_v1, 0.0  ;;  %v251_v22 = vmax.f32 %v247_v2, 0.0  ;;  %p454_p2 = scmp.gt.s32.totalorder %s893_s27, 16 }
  0x53   : > { %244 = vst [vmem:[%s895_s5] sm:$0xff] %v735_v0  ;;  %245 = vst [vmem:[%s895_s5 + $0x8] sm:$0xff] %v735_v0  ;;  %v258_v5 = vsub.f32 0.0, %v256_v3  ;;  %v259_v6 = vsub.f32 0.0, %v257_v4  ;;  %v252_v19 = vmul.f32 %v248_v15, %v246_v1  ;;  %v253_v23 = vmul.f32 %v249_v16, %v247_v2 }
  0x55   : > { %v260_v7 = vmul.f32 1.442695, %v258_v5  ;;  %v262_v8 = vmul.f32 1.442695, %v259_v6  ;;  %v254_v27 = vsub.f32 %v250_v18, %v252_v19  ;;  %v255_v30 = vsub.f32 %v251_v22, %v253_v23 }
  0x57   : > { %560 = vpow2.f32 %v260_v7 }
  0x58   : > { %562 = vpow2.f32 %v262_v8 }
  0x64   : > { %v561_v9 = vpop.eup %560 }
  0x65   : > { %v563_v10 = vpop.eup %562  ;;  %v264_v11 = vadd.f32 1.0, %v561_v9  ;;  %v267_v13 = vmul.f32 -0.5, %v561_v9  ;;  %v270_v20 = vand.u32 2147483647, %v561_v9 }
  0x66   : > { %v273_v12 = vadd.f32 1.0, %v563_v10  ;;  %v276_v14 = vmul.f32 -0.5, %v563_v10  ;;  %v279_v24 = vand.u32 2147483647, %v563_v10 }
  0x67   : > { %564 = vlog2.f32 %v264_v11  ;;  %v268_v17 = vadd.f32 1.0, %v267_v13  ;;  %vm271_vm0 = vcmp.lt.f32.partialorder %v270_v20, 0.0004427343 }
  0x68   : > { %566 = vlog2.f32 %v273_v12  ;;  %v277_v21 = vadd.f32 1.0, %v276_v14  ;;  %vm280_vm1 = vcmp.lt.f32.partialorder %v279_v24, 0.0004427343 }
  0x69   : > { %v269_v25 = vmul.f32 %v561_v9, %v268_v17 }
  0x6a   : > { %v278_v28 = vmul.f32 %v563_v10, %v277_v21 }
  0x74   : > { %v565_v26 = vpop.eup %564 }
  0x75   : > { %v567_v29 = vpop.eup %566  ;;  %v266_v31 = vmul.f32 0.6931472, %v565_v26  ;;  %291 = sbr.rel (%p454_p2) target bundleno = 126 (0x7e), region = 44 }
  0x76   : > { %v275_v32 = vmul.f32 0.6931472, %v567_v29 }
  0x77   : > { %v272_v33 = vsel %vm271_vm0, %v269_v25, %v266_v31 }
  0x78   : > { %v281_v34 = vsel %vm280_vm1, %v278_v28, %v275_v32  ;;  %v282_v35 = vadd.f32 %v272_v33, %v254_v27 }
  0x79   : > { %v283_v36 = vadd.f32 %v281_v34, %v255_v30 }
  0x7a   : > { %v294_v37 = vld [vmem:[%s895_s5] sm:$0xff]  ;;  %v295_v38 = vld [vmem:[%s895_s5 + $0x8] sm:$0xff] }
  0x7b   : > { %v296_v39 = vadd.f32 %v294_v37, %v282_v35  ;;  %v297_v40 = vadd.f32 %v295_v38, %v283_v36 }
  0x7d   : > { %298 = vst [vmem:[%s895_s5] sm:$0xff] %v296_v39  ;;  %299 = vst [vmem:[%s895_s5 + $0x8] sm:$0xff] %v297_v40 }
  0x7e PF: > { %p455_p4 = scmp.le.s32.totalorder %s893_s27, 16 }
  0x80   : > { %302 = sbr.rel (%p455_p4) target bundleno = 146 (0x92), region = 48 }
  0x85   : > { %v303_v41 = vlaneseq  ;;  %v306_v42 = vstv %s453_s17  ;;  %v315_v46 = vld [vmem:[%s895_s5] sm:$0xff]  ;;  %v316_v49 = vld [vmem:[%s895_s5 + $0x8] sm:$0xff] }
  0x87   : > { %v304_v43 = vshrl.u32 %v303_v41, 7 }
  0x89   : > { %v307_v44 = vadd.s32 %v306_v42, %v304_v43  ;;  %v305_v45 = vadd.s32 8, %v304_v43 }
  0x8b   : > { %vm309_vm2 = vcmp.lt.s32.totalorder %v307_v44, 16  ;;  %v308_v47 = vadd.s32 %v306_v42, %v305_v45 }
  0x8c   : > { %v311_v48 = vsel %vm309_vm2, %v282_v35, 0.0 }
  0x8d   : > { %v317_v50 = vadd.f32 %v315_v46, %v311_v48  ;;  %vm310_vm3 = vcmp.lt.s32.totalorder %v308_v47, 16 }
  0x8e   : > { %v312_v51 = vsel %vm310_vm3, %v283_v36, 0.0 }
  0x8f   : > { %319 = vst [vmem:[%s895_s5] sm:$0xff] %v317_v50  ;;  %v318_v52 = vadd.f32 %v316_v49, %v312_v51 }
  0x91   : > { %320 = vst [vmem:[%s895_s5 + $0x8] sm:$0xff] %v318_v52 }
  0x92 PF: > { %s463_s21 = sshll.u32 %s721_s14, 8  ;;  %s335_s8 = sshll.u32 %s895_s5, 4  ;;  %s918_s8 = int_to_ptr.vmem [resolvable:$true] %s335_s8 }
  0x93   : > { %s915_s7 = scalar_lea.hbm %s975_s2, %s463_s21  ;;  %s922_s18 = scalar_lea.sflag [#allocation4], %s229_s12 }
  0x94   : > { %s624_s20 = scalar_lea.vmem %s918_s8, 256  ;;  %p986_p13 = scmp.ne.s32.totalorder %s980_s25, 0 }
  0x95   : > { %p625_p12 = scmp.ne.s32.totalorder %s918_s8, %s624_s20  ;;  %s736_s14 = smov [#allocation7]  }
  0x96   : > { %s628_s23 = sshll.u32 %s736_s14, 4  ;;  %s629_s23 = int_to_ptr.vmem [resolvable:$false] %s628_s23 }
  0x97   : > { %p626_p0 = pnand %p625_p12, %p986_p13  ;;  %s630_s30 = scalar_lea.vmem %s629_s23, 512 }
  0x98   : > { %p631_p9 = scmp.lt.s32.totalorder %s918_s8, %s629_s23  ;;  %p632_p10 = scmp.lt.s32.totalorder %s630_s30, %s624_s20 }
  0x99   : > { %p627_p8 = pneg %p626_p0 }
  0x9a   : > { %p633_p11 = por %p632_p10, %p631_p9 }
  0x9c   : > { %p634_p1 = pnand %p633_p11, %p627_p8 }
  0x9e   : > { %637 = shalt.err (!%p634_p1)
}
  0x9f   : > { %s638_s3 = scalar_lea.hbm %s915_s7, 256  ;;  %s642_s12 = scalar_lea.hbm %s975_s2, 512 }
  0xa0   : > { %p639_p3 = scmp.ne.s32.totalorder %s915_s7, %s638_s3  ;;  %p643_p5 = scmp.lt.s32.totalorder %s915_s7, %s975_s2 }
  0xa1   : > { %p644_p2 = scmp.lt.s32.totalorder %s642_s12, %s638_s3 }
  0xa2   : > { %p640_p7 = pnand %p639_p3, %p986_p13 }
  0xa3   : > { %p645_p4 = por %p644_p2, %p643_p5 }
  0xa4   : > { %p641_p6 = pneg %p640_p7 }
  0xa6   : > { %p646_p12 = pnand %p645_p4, %p641_p6 }
  0xa8   : > { %649 = shalt.err (!%p646_p12)
}
  0xa9   : > { %s737_s27 = smov 128   ;;  %s738_s5 = smov 8  }
  0xaa   : > { %468 = dma.vmem_to_hbm [thread:$0]  (%p986_p13), %s918_s8, 256, %s915_s7, %s922_s18, %s737_s27, %s737_s27, %s738_s5  }
  0xab PF: > { %s350_s21 = sand.u32 1, %s701_s9   ;;  %p987_p0 = scmp.ne.s32.totalorder %s981_s26, 0 }
  0xac   : > { %p988_p8 = scmp.ge.s32.totalorder %s729_s16, 2  ;;  %s351_s6 = scalar_lea.sflag [#allocation4], %s350_s21 }
  0xae   : > { %p478_p9 = pnand %p988_p8, %p987_p0 }
  0xb0   : > { %p479_p10 = pneg %p478_p9 }
  0xb2   : > { %695 = dma.done.wait (%p479_p10), %s351_s6, 256  }
  0xb3   : > { %697 = vsyncadd (%p479_p10), %s351_s6, 4294967040  ;;  %s21_s16 = sadd.s32 1, %s729_s16   ;;  %s989_s9 = smov %s705_s10 }
  0xb4   : > { %p18_p11 = scmp.ge.s32.totalorder %s21_s16, 4   ;;  %s990_s10 = smov %s709_s11 }
  0xb5   : > { %s991_s11 = smov %s812_s24  ;;  %s992_s12 = smov %s717_s13 }
  0xb6   : > { %s963_s13 = smov 0   ;;  %s993_s14 = smov %s725_s15 }
  0xb7   : > { %s994_s15 = smov %s996_s19  ;;  %20 = sbr.rel (!%p18_p11) target bundleno = 9 (0x9), region = 98 }
  0xbc   :  { %356 = vsyncpa [#allocation3], 1 }
  0xbd   :  { %358 = vsyncpa [#allocation3 + $0x1], 1 }
  0xbe   :  { %359 = vsyncpa [#allocation6], 1 }
  0xbf   :  { %361 = vsyncpa [#allocation6 + $0x1], 1 }
  0xc0   :  { %362 = vsyncpa [#allocation4], 1 }
  0xc1   :  { %364 = vsyncpa [#allocation4 + $0x1], 1 }

</bundles_post_ra>
